<compile_context>
chip_gen: v7x
topology: tpu7x:2x2x1
jax: 0.10.0
libtpu: 0.0.40
codegen_flags: <defaults>
</compile_context>

<pallas_src>
import functools

import jax
import jax.numpy as jnp
from jax.experimental import pallas as pl
from jax.experimental.pallas import tpu as pltpu


def _attention_kernel(x_ref, wqkv_ref, bqkv_ref, wproj_ref, bproj_ref, o_ref,
                      *, num_heads, head_dim, scale):
    _, N, D = x_ref.shape
    H, hd = num_heads, head_dim
    dt = x_ref.dtype

    x = x_ref[0]                                                    # (N, D), native dtype

    # ---- QKV projection: one wide matmul over the full D, f32 accumulation ----
    qkv = jnp.dot(x, wqkv_ref[...], preferred_element_type=jnp.float32)
    qkv = qkv + bqkv_ref[...].astype(jnp.float32)                   # (N, 3D) f32

    # ---- single relayout to head-batched form (3H, N, hd) ----
    qkv = qkv.astype(dt)                                            # keep MXU operands narrow
    qkv = jnp.transpose(qkv.reshape(N, 3 * H, hd), (1, 0, 2))       # (3H, N, hd)
    q = qkv[0:H]                                                    # (H, N, hd)
    k = qkv[H:2 * H]
    v = qkv[2 * H:3 * H]

    # ---- batched scaled-dot-product attention over all heads at once ----
    s = jnp.einsum("hnd,hmd->hnm", q, k,
                   preferred_element_type=jnp.float32) * scale      # (H, N, N) f32
    s = s - jnp.max(s, axis=-1, keepdims=True)
    p = jnp.exp(s)                                                  # f32
    l = jnp.sum(p, axis=-1, keepdims=True)                          # (H, N, 1) f32

    ctx = jnp.einsum("hnm,hmd->hnd", p.astype(dt), v,
                     preferred_element_type=jnp.float32)            # (H, N, hd) f32
    # Normalize the small (H, N, hd) context instead of the (H, N, N) probs.
    # (pl.reciprocal(..., approx=True) would move this to the EUP slot; exact
    #  reciprocal kept here to stay within tight tolerance of the reference.)
    ctx = ctx * pl.reciprocal(l, approx=False)

    # ---- merge heads (one relayout) + wide output projection ----
    ctx = jnp.transpose(ctx.astype(dt), (1, 0, 2)).reshape(N, D)    # (N, D)
    out = jnp.dot(ctx, wproj_ref[...], preferred_element_type=jnp.float32)
    out = out + bproj_ref[...].astype(jnp.float32)

    o_ref[0] = out.astype(o_ref.dtype)


def attention_pallas(x, w_qkv, b_qkv, w_proj, b_proj, *, num_heads,
                     vmem_limit_bytes=None):
    """x: (B, N, D); w_qkv: (D, 3D); b_qkv: (1, 3D); w_proj: (D, D); b_proj: (1, D)."""
    B, N, D = x.shape
    assert D % num_heads == 0, "embed_dim must be divisible by num_heads"
    head_dim = D // num_heads
    scale = head_dim ** (-0.5)

    kernel = functools.partial(_attention_kernel,
                               num_heads=num_heads,
                               head_dim=head_dim,
                               scale=scale)

    isz = jnp.dtype(x.dtype).itemsize

    def nbytes(a):
        return a.size * jnp.dtype(a.dtype).itemsize

    # FLOPs: qkv proj (6*N*D^2) + QK^T (2*H*N^2*hd) + PV (2*H*N^2*hd) + out proj (2*N*D^2)
    flops = B * (8 * N * D * D + 4 * N * N * D)
    cost = pl.CostEstimate(
        flops=int(flops),
        transcendentals=int(B * num_heads * N * N),
        bytes_accessed=int(2 * B * N * D * isz
                           + nbytes(w_qkv) + nbytes(b_qkv)
                           + nbytes(w_proj) + nbytes(b_proj)),
    )

    if vmem_limit_bytes is None:
        # Weights + x/out blocks are double-buffered by BlockSpec; intermediates f32.
        need = (2 * (nbytes(w_qkv) + nbytes(w_proj) + nbytes(b_qkv) + nbytes(b_proj))
                + 4 * N * D * isz
                + 4 * (3 * N * D + num_heads * N * N + 2 * N * D))
        # Leave headroom, but stay under v7x's 64 MiB physical VMEM.
        vmem_limit_bytes = int(min(max(2 * need, 32 * 2 ** 20), 60 * 2 ** 20))

    return pl.pallas_call(
        kernel,
        out_shape=jax.ShapeDtypeStruct((B, N, D), x.dtype),
        grid_spec=pltpu.PrefetchScalarGridSpec(
            num_scalar_prefetch=0,
            grid=(B,),
            in_specs=[
                pl.BlockSpec((1, N, D), lambda b: (b, 0, 0)),        # x, one batch row
                pl.BlockSpec((D, 3 * D), lambda b: (0, 0)),          # W_qkv (VMEM-resident)
                pl.BlockSpec((1, 3 * D), lambda b: (0, 0)),          # b_qkv
                pl.BlockSpec((D, D), lambda b: (0, 0)),              # W_proj (VMEM-resident)
                pl.BlockSpec((1, D), lambda b: (0, 0)),              # b_proj
            ],
            out_specs=pl.BlockSpec((1, N, D), lambda b: (b, 0, 0)),
        ),
        compiler_params=pltpu.CompilerParams(
            dimension_semantics=("parallel",),
            vmem_limit_bytes=vmem_limit_bytes,
        ),
        cost_estimate=cost,
    )(x, w_qkv, b_qkv, w_proj, b_proj)


def attention_reference(x, w_qkv, b_qkv, w_proj, b_proj, *, num_heads):
    """Pure-JAX reference matching the PyTorch forward exactly."""
    B, N, D = x.shape
    head_dim = D // num_heads
    scale = head_dim ** (-0.5)

    qkv = x @ w_qkv + b_qkv                                # (B, N, 3D)
    qkv = qkv.reshape(B, N, 3, num_heads, head_dim)
    qkv = jnp.transpose(qkv, (2, 0, 3, 1, 4))              # (3, B, H, N, hd)
    q, k, v = qkv[0], qkv[1], qkv[2]

    attn = (q @ jnp.swapaxes(k, -2, -1)) * scale           # (B, H, N, N)
    attn = jax.nn.softmax(attn, axis=-1)
    out = attn @ v                                         # (B, H, N, hd)
    out = jnp.transpose(out, (0, 2, 1, 3)).reshape(B, N, D)
    return out @ w_proj + b_proj


if __name__ == "__main__":
    # Small, module-consistent shapes: dim=32, num_heads=4 (head_dim=8), B=2, N=8.
    B, N, D = 2, 8, 32
    num_heads = 4

    key = jax.random.PRNGKey(0)
    kx, kw1, kb1, kw2, kb2 = jax.random.split(key, 5)

    x = jax.random.normal(kx, (B, N, D), dtype=jnp.float32)

    # nn.Linear(dim, 3*dim, bias=True): weight (3D, D), bias (3D,)
    # stored pre-transposed as (D, 3D) / (1, 3D) for the kernel.
    w_qkv = jax.random.normal(kw1, (D, 3 * D), dtype=jnp.float32) * 0.05
    b_qkv = jax.random.normal(kb1, (1, 3 * D), dtype=jnp.float32) * 0.01
    # nn.Linear(dim, dim): weight (D, D), bias (D,)
    w_proj = jax.random.normal(kw2, (D, D), dtype=jnp.float32) * 0.05
    b_proj = jax.random.normal(kb2, (1, D), dtype=jnp.float32) * 0.01

    out = attention_pallas(x, w_qkv, b_qkv, w_proj, b_proj, num_heads=num_heads)
    out = jax.block_until_ready(out)

    ref = attention_reference(x, w_qkv, b_qkv, w_proj, b_proj, num_heads=num_heads)
    assert out.shape == (B, N, D)
    assert jnp.allclose(out, ref, atol=1e-4, rtol=1e-4), "mismatch vs reference"

    print("KERNEL_OK")
</pallas_src>

<mosaic_0001>
module attributes {stable_mosaic.version = 11 : i64} {
  func.func @_attention_kernel(%arg0: i32, %arg1: memref<1x8x32xf32, #tpu.memory_space<vmem>>, %arg2: memref<32x96xf32, #tpu.memory_space<vmem>>, %arg3: memref<1x96xf32, #tpu.memory_space<vmem>>, %arg4: memref<32x32xf32, #tpu.memory_space<vmem>>, %arg5: memref<1x32xf32, #tpu.memory_space<vmem>>, %arg6: memref<1x8x32xf32, #tpu.memory_space<vmem>>) attributes {dimension_semantics = [#tpu.dimension_semantics<parallel>], iteration_bounds = array<i64: 2>, scalar_prefetch = 0 : i64, scratch_operands = 0 : i64, tpu.core_type = #tpu.core_type<tc>, window_params = [{transform_indices = @transform_0, window_bounds = array<i64: 1, 8, 32>}, {pipeline_mode = #tpu.pipeline_mode<synchronous>, transform_indices = @transform_1, window_bounds = array<i64: 32, 96>}, {pipeline_mode = #tpu.pipeline_mode<synchronous>, transform_indices = @transform_2, window_bounds = array<i64: 1, 96>}, {pipeline_mode = #tpu.pipeline_mode<synchronous>, transform_indices = @transform_3, window_bounds = array<i64: 32, 32>}, {pipeline_mode = #tpu.pipeline_mode<synchronous>, transform_indices = @transform_4, window_bounds = array<i64: 1, 32>}, {transform_indices = @transform_5, window_bounds = array<i64: 1, 8, 32>}]} {
    %c0 = arith.constant 0 : index
    %c0_0 = arith.constant 0 : index
    %c0_1 = arith.constant 0 : index
    %0 = vector.load %arg1[%c0, %c0_0, %c0_1] : memref<1x8x32xf32, #tpu.memory_space<vmem>>, vector<1x8x32xf32>
    %1 = vector.shape_cast %0 : vector<1x8x32xf32> to vector<8x32xf32>
    %c0_2 = arith.constant 0 : index
    %c0_3 = arith.constant 0 : index
    %2 = vector.load %arg2[%c0_2, %c0_3] : memref<32x96xf32, #tpu.memory_space<vmem>>, vector<32x96xf32>
    %cst = arith.constant dense<0.000000e+00> : vector<8x96xf32>
    %3 = tpu.matmul %1, %2, %cst {dimension_numbers = #tpu.dot_dimension_numbers<[1], [0], [0], [1], [0, 0, 1, 1], [], []>} : vector<8x32xf32>, vector<32x96xf32>, vector<8x96xf32> -> vector<8x96xf32>
    %c0_4 = arith.constant 0 : index
    %c0_5 = arith.constant 0 : index
    %4 = vector.load %arg3[%c0_4, %c0_5] : memref<1x96xf32, #tpu.memory_space<vmem>>, vector<1x96xf32>
    %5 = vector.broadcast %4 : vector<1x96xf32> to vector<8x96xf32>
    %6 = arith.addf %3, %5 : vector<8x96xf32>
    %7 = vector.shape_cast %6 : vector<8x96xf32> to vector<8x12x8xf32>
    %8 = tpu.transpose %7, [1, 0, 2] : vector<8x12x8xf32> -> vector<12x8x8xf32>
    %9 = vector.extract_strided_slice %8 {offsets = [0, 0, 0], sizes = [4, 8, 8], strides = [1, 1, 1]} : vector<12x8x8xf32> to vector<4x8x8xf32>
    %10 = vector.extract_strided_slice %8 {offsets = [4, 0, 0], sizes = [4, 8, 8], strides = [1, 1, 1]} : vector<12x8x8xf32> to vector<4x8x8xf32>
    %11 = vector.extract_strided_slice %8 {offsets = [8, 0, 0], sizes = [4, 8, 8], strides = [1, 1, 1]} : vector<12x8x8xf32> to vector<4x8x8xf32>
    "tpu.trace_start"() <{level = 10 : i32, message = "hnd,hmd->hnm"}> : () -> ()
    %cst_6 = arith.constant dense<0.000000e+00> : vector<4x8x8xf32>
    %12 = tpu.matmul %9, %10, %cst_6 {dimension_numbers = #tpu.dot_dimension_numbers<[2], [2], [1], [1], [0, 0, 0, 1, 1, 1], [0], [0]>} : vector<4x8x8xf32>, vector<4x8x8xf32>, vector<4x8x8xf32> -> vector<4x8x8xf32>
    "tpu.trace_stop"() : () -> ()
    %cst_7 = arith.constant 0.353553385 : f32
    %13 = vector.broadcast %cst_7 : f32 to vector<4x8x8xf32>
    %14 = arith.mulf %12, %13 : vector<4x8x8xf32>
    %cst_8 = arith.constant dense<0xFF800000> : vector<4x8xf32>
    %15 = vector.multi_reduction <maximumf>, %14, %cst_8 [2] : vector<4x8x8xf32> to vector<4x8xf32>
    %16 = vector.shape_cast %15 : vector<4x8xf32> to vector<4x8x1xf32>
    %17 = vector.broadcast %16 : vector<4x8x1xf32> to vector<4x8x8xf32>
    %18 = arith.subf %14, %17 : vector<4x8x8xf32>
    %19 = math.exp %18 : vector<4x8x8xf32>
    %cst_9 = arith.constant dense<0.000000e+00> : vector<4x8xf32>
    %20 = vector.multi_reduction <add>, %19, %cst_9 [2] : vector<4x8x8xf32> to vector<4x8xf32>
    %21 = vector.shape_cast %20 : vector<4x8xf32> to vector<4x8x1xf32>
    "tpu.trace_start"() <{level = 10 : i32, message = "hnm,hmd->hnd"}> : () -> ()
    %cst_10 = arith.constant dense<0.000000e+00> : vector<4x8x8xf32>
    %22 = tpu.matmul %19, %11, %cst_10 {dimension_numbers = #tpu.dot_dimension_numbers<[2], [1], [1], [2], [0, 0, 0, 1, 1, 2], [0], [0]>} : vector<4x8x8xf32>, vector<4x8x8xf32>, vector<4x8x8xf32> -> vector<4x8x8xf32>
    "tpu.trace_stop"() : () -> ()
    %23 = tpu.reciprocal %21 : vector<4x8x1xf32> -> vector<4x8x1xf32>
    %24 = vector.broadcast %23 : vector<4x8x1xf32> to vector<4x8x8xf32>
    %25 = arith.mulf %22, %24 : vector<4x8x8xf32>
    %26 = tpu.transpose %25, [1, 0, 2] : vector<4x8x8xf32> -> vector<8x4x8xf32>
    %27 = vector.shape_cast %26 : vector<8x4x8xf32> to vector<8x32xf32>
    %c0_11 = arith.constant 0 : index
    %c0_12 = arith.constant 0 : index
    %28 = vector.load %arg4[%c0_11, %c0_12] : memref<32x32xf32, #tpu.memory_space<vmem>>, vector<32x32xf32>
    %cst_13 = arith.constant dense<0.000000e+00> : vector<8x32xf32>
    %29 = tpu.matmul %27, %28, %cst_13 {dimension_numbers = #tpu.dot_dimension_numbers<[1], [0], [0], [1], [0, 0, 1, 1], [], []>} : vector<8x32xf32>, vector<32x32xf32>, vector<8x32xf32> -> vector<8x32xf32>
    %c0_14 = arith.constant 0 : index
    %c0_15 = arith.constant 0 : index
    %30 = vector.load %arg5[%c0_14, %c0_15] : memref<1x32xf32, #tpu.memory_space<vmem>>, vector<1x32xf32>
    %31 = vector.broadcast %30 : vector<1x32xf32> to vector<8x32xf32>
    %32 = arith.addf %29, %31 : vector<8x32xf32>
    %c0_16 = arith.constant 0 : index
    %c0_17 = arith.constant 0 : index
    %c0_18 = arith.constant 0 : index
    %33 = vector.load %arg6[%c0_16, %c0_17, %c0_18] : memref<1x8x32xf32, #tpu.memory_space<vmem>>, vector<1x8x32xf32>
    %34 = vector.shape_cast %33 : vector<1x8x32xf32> to vector<8x32xf32>
    %35 = vector.shape_cast %32 : vector<8x32xf32> to vector<1x8x32xf32>
    tpu.vector_store %arg6[%c0_16, %c0_17, %c0_18], %35 {strides = array<i32>} : memref<1x8x32xf32, #tpu.memory_space<vmem>>, vector<1x8x32xf32>,
    return
  }
  func.func @transform_0(%arg0: i32) -> (i32, i32, i32) {
    %c0_i32 = arith.constant 0 : i32
    %c0_i32_0 = arith.constant 0 : i32
    %c0_i32_1 = arith.constant 0 : i32
    return %arg0, %c0_i32, %c0_i32_0 : i32, i32, i32
  }
  func.func @transform_1(%arg0: i32) -> (i32, i32) {
    %c0_i32 = arith.constant 0 : i32
    %c0_i32_0 = arith.constant 0 : i32
    %c0_i32_1 = arith.constant 0 : i32
    return %c0_i32, %c0_i32_0 : i32, i32
  }
  func.func @transform_2(%arg0: i32) -> (i32, i32) {
    %c0_i32 = arith.constant 0 : i32
    %c0_i32_0 = arith.constant 0 : i32
    %c0_i32_1 = arith.constant 0 : i32
    return %c0_i32, %c0_i32_0 : i32, i32
  }
  func.func @transform_3(%arg0: i32) -> (i32, i32) {
    %c0_i32 = arith.constant 0 : i32
    %c0_i32_0 = arith.constant 0 : i32
    %c0_i32_1 = arith.constant 0 : i32
    return %c0_i32, %c0_i32_0 : i32, i32
  }
  func.func @transform_4(%arg0: i32) -> (i32, i32) {
    %c0_i32 = arith.constant 0 : i32
    %c0_i32_0 = arith.constant 0 : i32
    %c0_i32_1 = arith.constant 0 : i32
    return %c0_i32, %c0_i32_0 : i32, i32
  }
  func.func @transform_5(%arg0: i32) -> (i32, i32, i32) {
    %c0_i32 = arith.constant 0 : i32
    %c0_i32_0 = arith.constant 0 : i32
    %c0_i32_1 = arith.constant 0 : i32
    return %arg0, %c0_i32, %c0_i32_0 : i32, i32, i32
  }
}

</mosaic_0001>

<bundles_post_ra>
// kernel: tpu_custom_call.1
= control target key start
LH: loop header
LB: loop body
LE: loop exit
PB: predicated region body
PF: predicated region fallthrough
CT: control target
= control target key end

     0   :  { %10 = vsyncpa [#allocation3], 0  ;;  %s2622_s0 = inlined_call_operand.hbm [shape: f32[2,8,32], index: 0, kind: input, shape index: {}]   ;;  %s2623_s1 = inlined_call_operand.hbm [shape: f32[32,96], index: 1, kind: input, shape index: {}]   ;;  %s2624_s2 = inlined_call_operand.vmem [shape: f32[1,96], index: 2, kind: input, shape index: {}]   ;;  %s2625_s3 = inlined_call_operand.hbm [shape: f32[32,32], index: 3, kind: input, shape index: {}]   ;;  %s2626_s4 = inlined_call_operand.vmem [shape: f32[1,32], index: 4, kind: input, shape index: {}]   ;;  %s2627_s5 = inlined_call_operand.hbm [shape: f32[2,8,32], index: 5, kind: output, shape index: {}]  }
   0x1   :  { %12 = vsyncpa [#allocation3 + $0x1], 0 }
   0x2   :  { %13 = vsyncpa [#allocation6], 0 }
   0x3   :  { %14 = vsyncpa [#allocation4], 0 }
   0x4   :  { %16 = vsyncpa [#allocation4 + $0x1], 0  ;;  %s2244_s18 = smov 0   ;;  %s2246_s19 = smov 0  }
   0x5   :  { %s2248_s20 = smov 0   ;;  %s2250_s21 = smov 0  }
   0x6 LB: > { %s2265_s22 = sadd.s32 4294967295, %s2187_s21   ;;  %s1783_s23 = sadd.s32 4294967294, %s2187_s21   ;;  %s2187_s21 = sphi %s2250_s21, %s2647_s21   ;;  %s2183_s20 = sphi %s2248_s20, %s2646_s20   ;;  %s2179_s19 = sphi %s2246_s19, %s2645_s19   ;;  %s2175_s18 = sphi %s2244_s18, %s2644_s18  }
   0x7   : > { %p42_p0 = scmp.ne.s32.totalorder %s2179_s19, %s2175_s18  ;;  %p2628_p1 = scmp.eq.s32.totalorder %s2265_s22, 0 }
   0x8   : > { %p156_p3 = scmp.eq.s32.totalorder %s1783_s23, 1  ;;  %p1784_p5 = scmp.ge.s32.totalorder %s2187_s21, 1 }
   0x9   : > { %p2274_p4 = por %p2628_p1, %p42_p0  ;;  %p163_p7 = scmp.lt.s32.totalorder %s2187_s21, 3 }
   0xa   : > { %p2279_p6 = por %p156_p3, %p42_p0  ;;  %s2189_s27 = smov [#allocation5]  }
   0xb   : > { %s2631_s24 = scalar_select %p2274_p4, 1, 0 }
   0xc   : > { %s2632_s25 = scalar_select %p2279_p6, 1, 0 }
   0xd   : > { %p2284_p8 = pnand %p1784_p5, %p163_p7  ;;  %s175_s28 = sshll.u32 %s2189_s27, 4  ;;  %s2288_s28 = int_to_ptr.vmem [resolvable:$true] %s175_s28 }
   0xe   : > { %s2190_s30 = smov [#allocation7]   ;;  %s2031_s9 = scalar_lea.hbm %s2623_s1, 512 }
   0xf   : > { %p1939_p9 = pneg %p2284_p8  ;;  %s191_s6 = sshll.u32 %s2190_s30, 4  ;;  %s2299_s6 = int_to_ptr.vmem [resolvable:$true] %s191_s6 }
  0x10   : > { %p2032_p12 = scmp.ne.s32.totalorder %s2623_s1, %s2031_s9  ;;  %p2038_p5 = scmp.lt.u32.totalorder %s2031_s9, %s2623_s1 }
  0x11   : > { %p2295_p11 = pnand %p1939_p9, %p2628_p1 }
  0x13   : > { %p2033_p13 = pneg %p2295_p11 }
  0x15   : > { %p2034_p0 = pnand %p2033_p13, %p2032_p12 }
  0x17   : > { %p2035_p3 = pneg %p2034_p0 }
  0x19   : > { %p2040_p7 = pnand %p2038_p5, %p2035_p3 }
  0x1b   : > { %2043 = shalt.err (!%p2040_p7)
}
  0x1c   : > { %s2044_s14 = scalar_lea.vmem %s2288_s28, 512  ;;  %p2052_p2 = scmp.lt.s32.totalorder %s2288_s28, %s2288_s28 }
  0x1d   : > { %p2045_p9 = scmp.ne.s32.totalorder %s2288_s28, %s2044_s14  ;;  %p2053_p12 = scmp.lt.s32.totalorder %s2044_s14, %s2044_s14 }
  0x1f   : > { %p2047_p10 = pnand %p2045_p9, %p2033_p13  ;;  %p2054_p0 = por %p2053_p12, %p2052_p2 }
  0x21   : > { %p2048_p1 = pneg %p2047_p10 }
  0x23   : > { %p2055_p6 = pnand %p2054_p0, %p2048_p1 }
  0x25   : > { %2058 = shalt.err (!%p2055_p6)
}
  0x26   : > { %s2191_s15 = smov 128   ;;  %s2192_s16 = smov 8  }
  0x27   : > { %1942 = dma.hbm_to_vmem [thread:$0]  (!%p2295_p11), %s2623_s1, 512, %s2288_s28, [#allocation6], %s2191_s15, %s2191_s15, %s2192_s16  }
  0x28   : > { %s2059_s7 = scalar_lea.hbm %s2625_s3, 512 }
  0x29   : > { %p2060_p2 = scmp.ne.s32.totalorder %s2625_s3, %s2059_s7  ;;  %p2066_p10 = scmp.lt.u32.totalorder %s2059_s7, %s2625_s3 }
  0x2b   : > { %p2062_p1 = pnand %p2060_p2, %p2033_p13 }
  0x2d   : > { %p2063_p6 = pneg %p2062_p1 }
  0x2f   : > { %p2068_p3 = pnand %p2066_p10, %p2063_p6 }
  0x31   : > { %2071 = shalt.err (!%p2068_p3)
}
  0x32   : > { %s2072_s28 = scalar_lea.vmem %s2299_s6, 512  ;;  %p2080_p12 = scmp.lt.s32.totalorder %s2299_s6, %s2299_s6 }
  0x33   : > { %p2073_p5 = scmp.ne.s32.totalorder %s2299_s6, %s2072_s28  ;;  %p2081_p0 = scmp.lt.s32.totalorder %s2072_s28, %s2072_s28 }
  0x35   : > { %p2075_p7 = pnand %p2073_p5, %p2033_p13  ;;  %p2082_p2 = por %p2081_p0, %p2080_p12 }
  0x37   : > { %p2076_p9 = pneg %p2075_p7 }
  0x39   : > { %p2083_p1 = pnand %p2082_p2, %p2076_p9 }
  0x3b   : > { %2086 = shalt.err (!%p2083_p1)
}
  0x3c   : > { %1945 = dma.hbm_to_vmem [thread:$0]  (!%p2295_p11), %s2625_s3, 512, %s2299_s6, [#allocation6], %s2191_s15, %s2191_s15, %s2192_s16  }
  0x3d   : > { %s2354_s14 = sadd.s32 1, %s2187_s21   ;;  %s29_s29 = sadd.s32 1, %s2183_s20 }
  0x3e   : > { %s26_s17 = ssub.s32 %s2187_s21, %s2354_s14  ;;  %p36_p13 = scmp.ne.s32.totalorder %s2183_s20, %s2179_s19 }
  0x3f   : > { %p27_p6 = scmp.eq.s32.totalorder %s26_s17, 0  ;;  %p37_p10 = scmp.eq.s32.totalorder %s2187_s21, 0 }
  0x40   : > { %p2635_p3 = scmp.eq.s32.totalorder %s2265_s22, 1  ;;  %p1956_p7 = scmp.lt.s32.totalorder %s2187_s21, 2 }
  0x41   : > { %s2370_s27 = scalar_select %p27_p6, %s2183_s20, %s29_s29  }
  0x42   : > { %p2364_p5 = por %p2635_p3, %p36_p13  ;;  %p38_p9 = por %p37_p10, %p36_p13 }
  0x43   : > { %s208_s30 = sand.u32 1, %s2183_s20   ;;  %s1789_s6 = sshll.u32 %s2187_s21, 7 }
  0x44   : > { %s2636_s23 = scalar_select %p2364_p5, 1, 0 }
  0x45   : > { %s1788_s7 = sshll.u32 %s208_s30, 3  ;;  %s2377_s8 = scalar_lea.hbm %s2622_s0, %s1789_s6 }
  0x46   : > { %s212_s9 = scalar_lea.vmem [#allocation2], %s1788_s7  ;;  %p2381_p11 = pnand %p1956_p7, %p38_p9 }
  0x47   : > { %s219_s10 = sshll.u32 %s212_s9, 4  ;;  %s209_s28 = scalar_lea.sflag [#allocation3], %s208_s30  ;;  %s2379_s10 = int_to_ptr.vmem [resolvable:$true] %s219_s10 }
  0x48   : > { %s2087_s12 = scalar_lea.hbm %s2377_s8, 128  ;;  %p2089_p0 = pneg %p2381_p11 }
  0x49   : > { %p2088_p12 = scmp.ne.s32.totalorder %s2377_s8, %s2087_s12  ;;  %s2092_s17 = scalar_lea.hbm %s2622_s0, 256 }
  0x4a   : > { %p2093_p13 = scmp.lt.u32.totalorder %s2377_s8, %s2622_s0  ;;  %p2094_p6 = scmp.lt.u32.totalorder %s2092_s17, %s2087_s12 }
  0x4b   : > { %p2090_p2 = pnand %p2089_p0, %p2088_p12  ;;  %p2096_p3 = scmp.lt.u32.totalorder %s2087_s12, %s2377_s8 }
  0x4c   : > { %p2095_p10 = por %p2094_p6, %p2093_p13 }
  0x4d   : > { %p2091_p1 = pneg %p2090_p2 }
  0x4e   : > { %p2097_p7 = por %p2096_p3, %p2095_p10 }
  0x50   : > { %p2098_p9 = pnand %p2097_p7, %p2091_p1 }
  0x52   : > { %2101 = shalt.err (!%p2098_p9)
}
  0x53   : > { %s2102_s30 = scalar_lea.vmem %s2379_s10, 128  ;;  %s2193_s15 = smov [#allocation2]  }
  0x54   : > { %p2103_p12 = scmp.ne.s32.totalorder %s2379_s10, %s2102_s30  ;;  %s2107_s16 = sshll.u32 %s2193_s15, 4  ;;  %s2108_s16 = int_to_ptr.vmem [resolvable:$false] %s2107_s16 }
  0x55   : > { %s2109_s9 = scalar_lea.vmem %s2108_s16, 256  ;;  %p2110_p4 = scmp.lt.s32.totalorder %s2379_s10, %s2108_s16 }
  0x56   : > { %p2105_p2 = pnand %p2103_p12, %p2089_p0  ;;  %p2111_p13 = scmp.lt.s32.totalorder %s2109_s9, %s2102_s30 }
  0x58   : > { %p2106_p5 = pneg %p2105_p2  ;;  %p2112_p6 = por %p2111_p13, %p2110_p4 }
  0x5a   : > { %p2113_p10 = pnand %p2112_p6, %p2106_p5 }
  0x5c   : > { %2116 = shalt.err (!%p2113_p10)
}
  0x5d   : > { %1949 = dma.hbm_to_vmem [thread:$0]  (!%p2381_p11), %s2377_s8, 128, %s2379_s10, %s209_s28  }
  0x5e   : > { %228 = sbr.rel (%p2284_p8) target bundleno = 1451 (0x5ab), region = 40  ;;  %s2413_s12 = sand.u32 (!%p2284_p8), 1, %s2179_s19  }
  0x5f   : > { %s1791_s13 = sshll.u32 (!%p2284_p8), %s2413_s12, 3  ;;  %s231_s29 = scalar_lea.sflag (!%p2284_p8), [#allocation3], %s2413_s12 }
  0x60   : > { %s234_s17 = scalar_lea.vmem (!%p2284_p8), [#allocation2], %s1791_s13  ;;  %p2638_p4 = scmp.ne.s32.totalorder (!%p2284_p8), %s2631_s24, 0 }
  0x65   : > { %2162 = dma.done.wait (%p2638_p4), %s231_s29, 128  }
  0x66   : > { %2164 = vsyncadd (%p2638_p4), %s231_s29, 4294967168  ;;  %p2639_p5 = scmp.eq.s32.totalorder %s2265_s22, 0 }
  0x68   : > { %2166 = dma.done.wait (%p2639_p5), [#allocation6], 1024   ;;  %p2640_p8 = pmov %p2639_p5 }
  0x69   : > { %v2194_v0 = vmov 0.0|0.0   ;;  %vm2195_vm0 = vmmov 0   ;;  %v2196_v1 = vmov 0.0   ;;  %v270_v2 = vld [vmem:[#allocation5] sm:$0xff]  ;;  %v271_v3 = vld [vmem:[#allocation5 + $0x8] sm:$0xff]  ;;  %v272_v4 = vld [vmem:[#allocation5 + $0x10] sm:$0xff]  ;;  %v394_v15 = vlaneseq }
  0x6a   : > { %2168 = vsyncadd (%p2640_p8), [#allocation6], 4294966272  ;;  %1915 = vmatprep.subr.bf16.mxu0 %v2194_v0  ;;  %1861 = vmatprep.mubr.msk.f32.mxu0 %vm2195_vm0, %v2196_v1  ;;  %v1916_v5 = vpack.c.bf16 %v271_v3, %v270_v2  ;;  %v273_v6 = vld [vmem:[#allocation5 + $0x18] sm:$0xff]  ;;  %vm281_vm1 = vcmask 261120   ;;  %v1795_v9 = vld [vmem:[%s2624_s2] ss:$0 sm:$0xff] }
  0x6b   : > { %1864 = vmatprep.subr.mxu1 %v2196_v1  ;;  %1866 = vmatprep.mubr.msk.f32.mxu1 %vm2195_vm0, %v2196_v1  ;;  %v1919_v7 = vpack.c.bf16 %v273_v6, %v272_v4  ;;  %v269_v8 = vld [vmem:[%s234_s17] sm:$0xff]  ;;  %s2197_s8 = smov 80   ;;  %s2198_s10 = smov 96   ;;  %v2206_v13 = vmov 1983009808   ;;  %v395_v19 = vshrl.u32 %v394_v15, 7 }
  0x6c   : > { %1917 = vmatpush3.bf16.msra.mxu0 %v1916_v5  ;;  %s2199_s11 = smov 72   ;;  %s2200_s28 = smov 88   ;;  %v392_v14 = vunpack.c.l.s4 %v2206_v13  ;;  %v2207_v16 = vmov 1934713408   ;;  %vm797_vm2 = vcmask 64512   ;;  %vm1591_vm3 = vcmask 130048  }
  0x6d   : > { %1918 = vmatprep.subr.bf16.mxu0 %v2194_v0  ;;  %s2201_s7 = smov 112   ;;  %s2202_s6 = smov 120   ;;  %v456_v17 = vunpack.c.l.s4 %v2207_v16  ;;  %vm1593_vm4 = vcmask 195584  }
  0x6e   : > { %s2203_s30 = smov 56   ;;  %s2204_s15 = smov 104   ;;  %v393_v18 = vunpack.c.0.s8 %v392_v14 }
  0x6f   : > { %s2205_s16 = smov 64   ;;  %v457_v22 = vunpack.c.0.s8 %v456_v17  ;;  %s2208_s9 = smov 48  }
  0x70   : > { %1920 = vmatpush3.bf16.msra.mxu0 %v1919_v7  ;;  %v2452_v23 = vsub.s32 %v393_v18, %v395_v19  ;;  %s2209_s29 = smov 40   ;;  %s2210_s17 = smov 16  }
  0x71   : > { %1884 = vmatprep.subr.mxu0 %v2196_v1  ;;  %v2454_v30 = vsub.s32 %v457_v22, %v395_v19  ;;  %s2211_s24 = smov 8   ;;  %s2212_s26 = smov 24  }
  0x72   : > { %p2641_p0 = scmp.ne.s32.totalorder %s2636_s23, 0 }
  0x73   : > { %1862 = vmatmul.mubr.msk.f32.vlgmr.msra.gmra.mrb[0].mxu0 %vm281_vm1, %v269_v8 }
  0x74   : > { %1886 = vmatprep.mubr.msk.f32.mxu0 %vm2195_vm0, %v2196_v1 }
 0x146   : > { %v351_v10 = vpop.f32.mrb[0].mxu0 }
 0x147   : > { %v2441_v11 = vadd.f32 %v1795_v9, %v351_v10  ;;  %v1863_v12 = vpop.f32.mrb[1].mxu0 }
 0x149   : > { %371 = vrot.lane.b32.xlu1 %v2441_v11, %s2197_s8  ;;  %365 = vrot.lane.b32.xlu0 %v2441_v11, %s2198_s10 }
 0x14d   : > { %374 = vrot.lane.b32.xlu1 %v2441_v11, %s2199_s11  ;;  %368 = vrot.lane.b32.xlu0 %v2441_v11, %s2200_s28  ;;  %s1824_s11 = sshll.u32 %s2265_s22, 7  ;;  %s268_s28 = scalar_lea.vmem [#allocation8], %s1791_s13 }
 0x14e   : > { %s2213_s13 = smov [#allocation8]  }
 0x151   : > { %359 = vrot.lane.b32.xlu1 %v2441_v11, %s2201_s7  ;;  %356 = vrot.lane.b32.xlu0 %v2441_v11, %s2202_s6  ;;  %s1694_s7 = sshll.u32 %s268_s28, 4  ;;  %s2579_s7 = int_to_ptr.vmem [resolvable:$true] %s1694_s7 }
 0x152   : > { %s2117_s22 = scalar_lea.vmem %s2579_s7, 128 }
 0x153   : > { %p2118_p11 = scmp.ne.s32.totalorder %s2579_s7, %s2117_s22 }
 0x155   : > { %380 = vrot.lane.b32.xlu1 %v2441_v11, %s2203_s30  ;;  %362 = vrot.lane.b32.xlu0 %v2441_v11, %s2204_s15  ;;  %s2577_s15 = scalar_lea.hbm %s2627_s5, %s1824_s11  ;;  %p2119_p1 = pnand %p2118_p11, %p2641_p0 }
 0x157   : > { %p2120_p3 = pneg %p2119_p1 }
 0x159   : > { %377 = vrot.lane.b32.xlu0 %v2441_v11, %s2205_s16  ;;  %s1681_s16 = scalar_lea.sflag [#allocation4], %s2413_s12 }
 0x1bb   : > { %v372_v20 = vpop.permute.xlu1 %371  ;;  %v366_v21 = vpop.permute.xlu0 %365 }
 0x1bc   : > { %v421_v24 = vcombine.low %v366_v21, %v372_v20  ;;  %v422_v25 = vcombine.high %v366_v21, %v372_v20 }
 0x1be   : > { %v429_v31 = vrot.slane %v421_v24, %v2452_v23  ;;  %v436_v32 = vrot.slane %v422_v25, %v2452_v23 }
 0x1bf   : > { %v375_v26 = vpop.permute.xlu1 %374  ;;  %v369_v27 = vpop.permute.xlu0 %368 }
 0x1c0   : > { %v437_v28 = vcombine.low %v369_v27, %v375_v26  ;;  %v438_v29 = vcombine.high %v369_v27, %v375_v26 }
 0x1c2   : > { %v445_v33 = vrot.slane %v437_v28, %v2452_v23  ;;  %v452_v34 = vrot.slane %v438_v29, %v2452_v23 }
 0x1c3   : > { %v357_v35 = vpop.permute.xlu0 %356  ;;  %v360_v40 = vpop.permute.xlu1 %359 }
 0x1c4   : > { %v485_v36 = vcombine.low %v429_v31, %v445_v33  ;;  %v486_v37 = vcombine.high %v429_v31, %v445_v33  ;;  %v501_v38 = vcombine.low %v436_v32, %v452_v34  ;;  %v502_v39 = vcombine.high %v436_v32, %v452_v34 }
 0x1c5   : > { %v389_v45 = vcombine.low %v2441_v11, %v360_v40  ;;  %v390_v46 = vcombine.high %v2441_v11, %v360_v40 }
 0x1c6   : > { %v493_v41 = vrot.slane %v485_v36, %v2454_v30  ;;  %v500_v42 = vrot.slane %v486_v37, %v2454_v30  ;;  %v509_v43 = vrot.slane %v501_v38, %v2454_v30  ;;  %v516_v44 = vrot.slane %v502_v39, %v2454_v30 }
 0x1c7   : > { %v363_v47 = vpop.permute.xlu0 %362  ;;  %v397_v58 = vrot.slane %v389_v45, %v2452_v23  ;;  %v404_v59 = vrot.slane %v390_v46, %v2452_v23 }
 0x1c8   : > { %v1798_v48 = vcombine.low %v493_v41, %v500_v42  ;;  %v1800_v49 = vcombine.high %v493_v41, %v500_v42  ;;  %v1802_v50 = vcombine.low %v509_v43, %v516_v44  ;;  %v1804_v51 = vcombine.high %v509_v43, %v516_v44 }
 0x1c9   : > { %v405_v52 = vcombine.low %v357_v35, %v363_v47  ;;  %v406_v53 = vcombine.high %v357_v35, %v363_v47 }
 0x1ca   : > { %v608_v54 = vrot.slane %v1798_v48, %v2452_v23  ;;  %v624_v55 = vrot.slane %v1800_v49, %v2452_v23  ;;  %v640_v56 = vrot.slane %v1802_v50, %v2452_v23  ;;  %v656_v57 = vrot.slane %v1804_v51, %v2452_v23 }
 0x1cb   : > { %v413_v60 = vrot.slane %v405_v52, %v2452_v23  ;;  %v420_v61 = vrot.slane %v406_v53, %v2452_v23 }
 0x1cc   : > { %v673_v62 = vcombine.low %v608_v54, %v624_v55  ;;  %v705_v63 = vcombine.low %v640_v56, %v656_v57  ;;  %v674_v25 = vcombine.high %v608_v54, %v624_v55  ;;  %v706_v26 = vcombine.high %v640_v56, %v656_v57 }
 0x1cd   : > { %v453_v2 = vcombine.low %v397_v58, %v413_v60  ;;  %v454_v3 = vcombine.high %v397_v58, %v413_v60  ;;  %v469_v4 = vcombine.low %v404_v59, %v420_v61  ;;  %v470_v5 = vcombine.high %v404_v59, %v420_v61  ;;  %v381_v59 = vpop.permute.xlu1 %380  ;;  %v378_v60 = vpop.permute.xlu0 %377 }
 0x1ce   : > { %v681_v6 = vrot.slane %v673_v62, %v2454_v30  ;;  %v713_v7 = vrot.slane %v705_v63, %v2454_v30  ;;  %v688_v34 = vrot.slane %v674_v25, %v2454_v30  ;;  %v720_v35 = vrot.slane %v706_v26, %v2454_v30 }
 0x1cf   : > { %v461_v8 = vrot.slane %v453_v2, %v2454_v30  ;;  %v468_v9 = vrot.slane %v454_v3, %v2454_v30  ;;  %v477_v10 = vrot.slane %v469_v4, %v2454_v30  ;;  %v484_v12 = vrot.slane %v470_v5, %v2454_v30 }
 0x1d0   : > { %v725_v13 = vcombine.low %v681_v6, %v713_v7  ;;  %v726_v33 = vcombine.high %v681_v6, %v713_v7  ;;  %v727_v39 = vcombine.low %v688_v34, %v720_v35  ;;  %v728_v41 = vcombine.high %v688_v34, %v720_v35 }
 0x1d1   : > { %v1797_v14 = vcombine.low %v461_v8, %v468_v9  ;;  %v1799_v15 = vcombine.high %v461_v8, %v468_v9  ;;  %v1801_v16 = vcombine.low %v477_v10, %v484_v12  ;;  %v1803_v17 = vcombine.high %v477_v10, %v484_v12 }
 0x1d2   : > { %1865 = vmatpush3.xpose.msk.msra.mxu1 %vm797_vm2, %v725_v13 }
 0x1d3   : > { %v601_v18 = vrot.slane %v1797_v14, %v2452_v23  ;;  %v617_v19 = vrot.slane %v1799_v15, %v2452_v23  ;;  %v633_v20 = vrot.slane %v1801_v16, %v2452_v23  ;;  %v649_v21 = vrot.slane %v1803_v17, %v2452_v23  ;;  %1869 = vmatprep.subr.mxu1 %v2196_v1 }
 0x1d5   : > { %v657_v22 = vcombine.low %v601_v18, %v617_v19  ;;  %v689_v24 = vcombine.low %v633_v20, %v649_v21  ;;  %v658_v29 = vcombine.high %v601_v18, %v617_v19  ;;  %v690_v31 = vcombine.high %v633_v20, %v649_v21 }
 0x1d7   : > { %v665_v27 = vrot.slane %v657_v22, %v2454_v30  ;;  %v697_v28 = vrot.slane %v689_v24, %v2454_v30  ;;  %v672_v37 = vrot.slane %v658_v29, %v2454_v30  ;;  %v704_v38 = vrot.slane %v690_v31, %v2454_v30 }
 0x1d9   : > { %v721_v32 = vcombine.low %v665_v27, %v697_v28  ;;  %v722_v36 = vcombine.high %v665_v27, %v697_v28  ;;  %v723_v40 = vcombine.low %v672_v37, %v704_v38  ;;  %v724_v42 = vcombine.high %v672_v37, %v704_v38 }
 0x1db   : > { %1867 = vmatmul.mubr.msk.f32.vlgmr.msra.gmra.mrb[0].mxu1 %vm797_vm2, %v721_v32 }
 0x1dc   : > { %1870 = vmatpush3.xpose.msk.msra.mxu1 %vm797_vm2, %v726_v33  ;;  %1871 = vmatprep.mubr.msk.f32.mxu1 %vm2195_vm0, %v2196_v1 }
 0x1dd   : > { %1874 = vmatprep.subr.mxu1 %v2196_v1 }
 0x1df   : > { %1872 = vmatmul.mubr.msk.f32.vlgmr.msra.gmra.mrb[2].mxu1 %vm797_vm2, %v722_v36 }
 0x1e0   : > { %1875 = vmatpush3.xpose.msk.msra.mxu1 %vm797_vm2, %v727_v39  ;;  %1876 = vmatprep.mubr.msk.f32.mxu1 %vm2195_vm0, %v2196_v1 }
 0x1e1   : > { %1879 = vmatprep.subr.mxu1 %v2196_v1 }
 0x1e3   : > { %1877 = vmatmul.mubr.msk.f32.vlgmr.msra.gmra.mrb[4].mxu1 %vm797_vm2, %v723_v40 }
 0x1e4   : > { %1880 = vmatpush3.xpose.msk.msra.mxu1 %vm797_vm2, %v728_v41  ;;  %1881 = vmatprep.mubr.msk.f32.mxu1 %vm2195_vm0, %v2196_v1 }
 0x1e5   : > { %1889 = vmatprep.subr.mxu1 %v2196_v1 }
 0x1e7   : > { %1882 = vmatmul.mubr.msk.f32.vlgmr.msra.gmra.mrb[6].mxu1 %vm797_vm2, %v724_v42 }
 0x1e8   : > { %1891 = vmatprep.mubr.msk.f32.mxu1 %vm2195_vm0, %v2196_v1 }
 0x2ae   : > { %v870_v43 = vpop.f32.mrb[0].mxu1 }
 0x2af   : > { %v1102_v44 = vmul.f32 0.35355338, %v870_v43  ;;  %v1868_v45 = vpop.f32.mrb[1].mxu1 }
 0x2b1   : > { %v1106_v46 = vsel %vm797_vm2, %v1102_v44, -inf }
 0x2b2   : > { %1107 = vmax.xlane.f32.xlu1 %v1106_v46  ;;  %v946_v47 = vpop.f32.mrb[2].mxu1 }
 0x2b3   : > { %v1103_v48 = vmul.f32 0.35355338, %v946_v47  ;;  %v1873_v49 = vpop.f32.mrb[3].mxu1 }
 0x2b5   : > { %v1109_v50 = vsel %vm797_vm2, %v1103_v48, -inf }
 0x2b6   : > { %1110 = vmax.xlane.f32.xlu0 %v1109_v50  ;;  %v1022_v51 = vpop.f32.mrb[4].mxu1 }
 0x2b7   : > { %v1104_v52 = vmul.f32 0.35355338, %v1022_v51  ;;  %v1878_v53 = vpop.f32.mrb[5].mxu1 }
 0x2b9   : > { %v1112_v54 = vsel %vm797_vm2, %v1104_v52, -inf }
 0x2ba   : > { %1113 = vmax.xlane.f32.xlu0 %v1112_v54  ;;  %v1098_v55 = vpop.f32.mrb[6].mxu1 }
 0x2bb   : > { %v1105_v56 = vmul.f32 0.35355338, %v1098_v55  ;;  %v1883_v57 = vpop.f32.mrb[7].mxu1 }
 0x2bd   : > { %v1115_v58 = vsel %vm797_vm2, %v1105_v56, -inf }
 0x2be   : > { %1116 = vmax.xlane.f32.xlu1 %v1115_v58 }
 0x2cf   : > { %383 = vrot.lane.b32.xlu1 %v2441_v11, %s2208_s9  ;;  %s2121_s9 = sshll.u32 %s2213_s13, 4  ;;  %s2122_s9 = int_to_ptr.vmem [resolvable:$false] %s2121_s9 }
 0x2d0   : > { %386 = vrot.lane.b32.xlu0 %v2441_v11, %s2209_s29  ;;  %s2123_s29 = scalar_lea.vmem %s2122_s9, 256  ;;  %p2124_p7 = scmp.lt.s32.totalorder %s2579_s7, %s2122_s9 }
 0x2d1   : > { %p2125_p9 = scmp.lt.s32.totalorder %s2123_s29, %s2117_s22 }
 0x2d3   : > { %p2126_p12 = por %p2125_p9, %p2124_p7 }
 0x2d5   : > { %p2127_p2 = pnand %p2126_p12, %p2120_p3 }
 0x33f   : > { %v1108_v61 = vpop.xlane.xlu1 %1107 }
 0x340   : > { %v1118_v62 = vsub.f32 %v1102_v44, %v1108_v61 }
 0x342   : > { %v1122_v63 = vmul.f32 1.442695, %v1118_v62 }
 0x343   : > { %v1111_v2 = vpop.xlane.xlu0 %1110 }
 0x344   : > { %2015 = vpow2.f32 %v1122_v63  ;;  %v1119_v3 = vsub.f32 %v1103_v48, %v1111_v2 }
 0x346   : > { %v1124_v4 = vmul.f32 1.442695, %v1119_v3 }
 0x347   : > { %v1114_v5 = vpop.xlane.xlu0 %1113 }
 0x348   : > { %2017 = vpow2.f32 %v1124_v4  ;;  %v1120_v6 = vsub.f32 %v1104_v52, %v1114_v5 }
 0x34a   : > { %v1126_v7 = vmul.f32 1.442695, %v1120_v6 }
 0x34b   : > { %v1117_v8 = vpop.xlane.xlu1 %1116  ;;  %v387_v9 = vpop.permute.xlu0 %386 }
 0x34c   : > { %2019 = vpow2.f32 %v1126_v7  ;;  %v1121_v10 = vsub.f32 %v1105_v56, %v1117_v8  ;;  %v541_v11 = vcombine.low %v381_v59, %v387_v9  ;;  %v542_v14 = vcombine.high %v381_v59, %v387_v9  ;;  %v1595_v59 = vld [vmem:[#allocation7] sm:$0xff] }
 0x34e   : > { %v2016_v12 = vpop.eup %2015  ;;  %v1128_v13 = vmul.f32 1.442695, %v1121_v10  ;;  %v549_v20 = vrot.slane %v541_v11, %v2452_v23  ;;  %v556_v21 = vrot.slane %v542_v14, %v2452_v23 }
 0x34f   : > { %v384_v15 = vpop.permute.xlu1 %383  ;;  %v1130_v16 = vsel %vm797_vm2, %v2016_v12, 0.0 }
 0x350   : > { %2021 = vpow2.f32 %v1128_v13  ;;  %v525_v17 = vcombine.low %v378_v60, %v384_v15  ;;  %v526_v18 = vcombine.high %v378_v60, %v384_v15  ;;  %1131 = vadd.xlane.f32.xlu1 %v1130_v16  ;;  %v1596_v60 = vld [vmem:[#allocation7 + $0x8] sm:$0xff] }
 0x351   : > { %v1922_v61 = vpack.c.bf16 %v1596_v60, %v1595_v59 }
 0x352   : > { %v2018_v19 = vpop.eup %2017  ;;  %v533_v22 = vrot.slane %v525_v17, %v2452_v23  ;;  %v540_v24 = vrot.slane %v526_v18, %v2452_v23 }
 0x353   : > { %v1133_v25 = vsel %vm797_vm2, %v2018_v19, 0.0 }
 0x354   : > { %v557_v26 = vcombine.low %v533_v22, %v549_v20  ;;  %v558_v27 = vcombine.high %v533_v22, %v549_v20  ;;  %v573_v28 = vcombine.low %v540_v24, %v556_v21  ;;  %v574_v29 = vcombine.high %v540_v24, %v556_v21  ;;  %1134 = vadd.xlane.f32.xlu0 %v1133_v25 }
 0x356   : > { %v2020_v31 = vpop.eup %2019  ;;  %v565_v32 = vrot.slane %v557_v26, %v2454_v30  ;;  %v572_v33 = vrot.slane %v558_v27, %v2454_v30  ;;  %v581_v34 = vrot.slane %v573_v28, %v2454_v30  ;;  %v588_v35 = vrot.slane %v574_v29, %v2454_v30 }
 0x357   : > { %v1136_v36 = vsel %vm797_vm2, %v2020_v31, 0.0 }
 0x358   : > { %v729_v37 = vcombine.low %v565_v32, %v572_v33  ;;  %v1805_v38 = vcombine.high %v565_v32, %v572_v33  ;;  %v745_v39 = vcombine.low %v581_v34, %v588_v35  ;;  %v1806_v40 = vcombine.high %v581_v34, %v588_v35  ;;  %1137 = vadd.xlane.f32.xlu0 %v1136_v36  ;;  %v1597_v32 = vld [vmem:[#allocation7 + $0x10] sm:$0xff]  ;;  %v1598_v33 = vld [vmem:[#allocation7 + $0x18] sm:$0xff] }
 0x35a   : > { %v2022_v41 = vpop.eup %2021  ;;  %v736_v42 = vrot.slane %v729_v37, %v2452_v23  ;;  %v744_v43 = vrot.slane %v1805_v38, %v2452_v23  ;;  %v752_v44 = vrot.slane %v745_v39, %v2452_v23  ;;  %v760_v45 = vrot.slane %v1806_v40, %v2452_v23 }
 0x35b   : > { %v1139_v46 = vsel %vm797_vm2, %v2022_v41, 0.0  ;;  %v1925_v38 = vpack.c.bf16 %v1598_v33, %v1597_v32 }
 0x35c   : > { %1140 = vadd.xlane.f32.xlu1 %v1139_v46  ;;  %v761_v47 = vcombine.low %v736_v42, %v744_v43  ;;  %v777_v48 = vcombine.low %v752_v44, %v760_v45  ;;  %v762_v49 = vcombine.high %v736_v42, %v744_v43  ;;  %v778_v50 = vcombine.high %v752_v44, %v760_v45 }
 0x35e   : > { %v769_v51 = vrot.slane %v761_v47, %v2454_v30  ;;  %v785_v52 = vrot.slane %v777_v48, %v2454_v30  ;;  %v776_v53 = vrot.slane %v762_v49, %v2454_v30  ;;  %v792_v54 = vrot.slane %v778_v50, %v2454_v30 }
 0x360   : > { %v793_v55 = vcombine.low %v769_v51, %v785_v52  ;;  %v794_v56 = vcombine.high %v769_v51, %v785_v52  ;;  %v795_v57 = vcombine.low %v776_v53, %v792_v54  ;;  %v796_v58 = vcombine.high %v776_v53, %v792_v54 }
 0x362   : > { %1885 = vmatpush3.msra.mxu0 %v793_v55  ;;  %1890 = vmatpush3.msra.mxu1 %v794_v56 }
 0x363   : > { %1887 = vmatmul.mubr.msk.f32.vlgmr.msra.gmra.mrb[2].mxu0 %vm797_vm2, %v2016_v12  ;;  %1892 = vmatmul.mubr.msk.f32.vlgmr.msra.gmra.mrb[8].mxu1 %vm797_vm2, %v2018_v19 }
 0x364   : > { %1894 = vmatprep.subr.mxu0 %v2196_v1  ;;  %1899 = vmatprep.subr.mxu1 %v2196_v1 }
 0x365   : > { %1895 = vmatpush3.msra.mxu0 %v795_v57  ;;  %1900 = vmatpush3.msra.mxu1 %v796_v58 }
 0x366   : > { %1896 = vmatprep.mubr.msk.f32.mxu0 %vm2195_vm0, %v2196_v1  ;;  %1901 = vmatprep.mubr.msk.f32.mxu1 %vm2195_vm0, %v2196_v1 }
 0x367   : > { %1897 = vmatmul.mubr.msk.f32.vlgmr.msra.gmra.mrb[4].mxu0 %vm797_vm2, %v2020_v31  ;;  %1902 = vmatmul.mubr.msk.f32.vlgmr.msra.gmra.mrb[10].mxu1 %vm797_vm2, %v2022_v41 }
 0x368   : > { %1921 = vmatprep.subr.bf16.mxu0 %v2194_v0  ;;  %1912 = vmatprep.mubr.msk.f32.mxu0 %vm2195_vm0, %v2196_v1 }
 0x369   : > { %1923 = vmatpush3.bf16.msra.mxu0 %v1922_v61 }
 0x36a   : > { %1924 = vmatprep.subr.bf16.mxu0 %v2194_v0 }
 0x36d   : > { %1926 = vmatpush3.bf16.msra.mxu0 %v1925_v38 }
 0x3dd   : > { %v1132_v63 = vpop.xlane.xlu1 %1131 }
 0x3de   : > { %2023 = vrcp.f32 %v1132_v63  ;;  %v1821_v63 = vld [vmem:[%s2626_s4] ss:$0 sm:$0xff] }
 0x3e1   : > { %v1135_v62 = vpop.xlane.xlu0 %1134 }
 0x3e2   : > { %2025 = vrcp.f32 %v1135_v62 }
 0x3e5   : > { %v1138_v2 = vpop.xlane.xlu0 %1137 }
 0x3e6   : > { %2027 = vrcp.f32 %v1138_v2 }
 0x3e8   : > { %v2024_v6 = vpop.eup %2023 }
 0x3e9   : > { %v1141_v3 = vpop.xlane.xlu1 %1140 }
 0x3ea   : > { %2029 = vrcp.f32 %v1141_v3 }
 0x3ec   : > { %v2026_v1 = vpop.eup %2025 }
 0x3f0   : > { %v2028_v9 = vpop.eup %2027 }
 0x3f4   : > { %v2030_v10 = vpop.eup %2029 }
 0x436   : > { %v1211_v4 = vpop.f32.mrb[2].mxu0  ;;  %v1284_v5 = vpop.f32.mrb[8].mxu1 }
 0x437   : > { %v1888_v7 = vpop.f32.mrb[3].mxu0  ;;  %v1893_v8 = vpop.f32.mrb[9].mxu1  ;;  %v1438_v11 = vmul.f32 %v2024_v6, %v1211_v4  ;;  %v1439_v0 = vmul.f32 %v2026_v1, %v1284_v5 }
 0x43a   : > { %v1357_v12 = vpop.f32.mrb[4].mxu0  ;;  %v1430_v13 = vpop.f32.mrb[10].mxu1 }
 0x43b   : > { %v1440_v14 = vmul.f32 %v2028_v9, %v1357_v12  ;;  %v1441_v15 = vmul.f32 %v2030_v10, %v1430_v13  ;;  %v1898_v16 = vpop.f32.mrb[5].mxu0  ;;  %v1903_v17 = vpop.f32.mrb[11].mxu1 }
 0x43d   : > { %v1442_v18 = vcombine.low %v1438_v11, %v1440_v14  ;;  %v1443_v19 = vcombine.high %v1438_v11, %v1440_v14  ;;  %v1458_v20 = vcombine.low %v1439_v0, %v1441_v15  ;;  %v1459_v21 = vcombine.high %v1439_v0, %v1441_v15 }
 0x43f   : > { %v1450_v22 = vrot.slane %v1442_v18, %v2452_v23  ;;  %v1457_v24 = vrot.slane %v1443_v19, %v2452_v23  ;;  %v1466_v25 = vrot.slane %v1458_v20, %v2452_v23  ;;  %v1473_v26 = vrot.slane %v1459_v21, %v2452_v23 }
 0x441   : > { %v1474_v27 = vcombine.low %v1450_v22, %v1466_v25  ;;  %v1475_v28 = vcombine.high %v1450_v22, %v1466_v25  ;;  %v1490_v29 = vcombine.low %v1457_v24, %v1473_v26  ;;  %v1491_v31 = vcombine.high %v1457_v24, %v1473_v26 }
 0x443   : > { %v1482_v34 = vrot.slane %v1474_v27, %v2454_v30  ;;  %v1489_v35 = vrot.slane %v1475_v28, %v2454_v30  ;;  %v1498_v36 = vrot.slane %v1490_v29, %v2454_v30  ;;  %v1505_v37 = vrot.slane %v1491_v31, %v2454_v30 }
 0x445   : > { %v1510_v39 = vcombine.low %v1482_v34, %v1489_v35  ;;  %v1819_v40 = vcombine.high %v1482_v34, %v1489_v35  ;;  %v1526_v41 = vcombine.low %v1498_v36, %v1505_v37  ;;  %v1820_v42 = vcombine.high %v1498_v36, %v1505_v37 }
 0x447   : > { %v1517_v43 = vrot.slane %v1510_v39, %v2452_v23  ;;  %v1525_v44 = vrot.slane %v1819_v40, %v2452_v23  ;;  %v1533_v45 = vrot.slane %v1526_v41, %v2452_v23  ;;  %v1541_v46 = vrot.slane %v1820_v42, %v2452_v23 }
 0x449   : > { %v1543_v47 = vcombine.high %v1517_v43, %v1525_v44  ;;  %v1559_v48 = vcombine.high %v1533_v45, %v1541_v46  ;;  %v1542_v49 = vcombine.low %v1517_v43, %v1525_v44  ;;  %v1558_v50 = vcombine.low %v1533_v45, %v1541_v46 }
 0x44b   : > { %v1557_v51 = vrot.slane %v1543_v47, %v2454_v30  ;;  %v1573_v52 = vrot.slane %v1559_v48, %v2454_v30  ;;  %v1550_v53 = vrot.slane %v1542_v49, %v2454_v30  ;;  %v1566_v54 = vrot.slane %v1558_v50, %v2454_v30 }
 0x44d   : > { %v1576_v55 = vcombine.low %v1557_v51, %v1573_v52  ;;  %v1575_v56 = vcombine.high %v1550_v53, %v1566_v54  ;;  %v1577_v57 = vcombine.high %v1557_v51, %v1573_v52  ;;  %v1574_v58 = vcombine.low %v1550_v53, %v1566_v54 }
 0x44f   : > { %1583 = vrot.lane.b32.xlu1 %v1576_v55, %s2210_s17  ;;  %1579 = vrot.lane.b32.xlu0 %v1575_v56, %s2211_s24 }
 0x453   : > { %1587 = vrot.lane.b32.xlu1 %v1577_v57, %s2212_s26 }
 0x4c1   : > { %v1584_v23 = vpop.permute.xlu1 %1583  ;;  %v1580_v59 = vpop.permute.xlu0 %1579 }
 0x4c2   : > { %v1590_v60 = vsel %vm797_vm2, %v1574_v58, %v1580_v59 }
 0x4c3   : > { %v1592_v61 = vsel %vm1591_vm3, %v1590_v60, %v1584_v23 }
 0x4c5   : > { %v1588_v30 = vpop.permute.xlu1 %1587 }
 0x4c6   : > { %v1594_v62 = vsel %vm1593_vm4, %v1592_v61, %v1588_v30 }
 0x4c7   : > { %1913 = vmatmul.mubr.msk.f32.vlgmr.msra.gmra.mrb[6].mxu0 %vm281_vm1, %v1594_v62 }
 0x59a   : > { %v1675_v2 = vpop.f32.mrb[6].mxu0 }
 0x59b   : > { %v1676_v3 = vadd.f32 %v1821_v63, %v1675_v2  ;;  %v1914_v4 = vpop.f32.mrb[7].mxu0 }
 0x59d   : > { %1679 = vst.msk [vmem:[%s268_s28] sm:$0xff] %vm281_vm1, %v1676_v3 }
 0x59e   : > { %2130 = shalt.err (!%p2127_p2)
}
 0x59f   : > { %s2131_s12 = scalar_lea.hbm %s2577_s15, 128  ;;  %s2135_s26 = scalar_lea.hbm %s2627_s5, 256 }
 0x5a0   : > { %p2132_p13 = scmp.ne.s32.totalorder %s2577_s15, %s2131_s12  ;;  %p2136_p4 = scmp.lt.u32.totalorder %s2577_s15, %s2627_s5 }
 0x5a1   : > { %p2137_p5 = scmp.lt.u32.totalorder %s2135_s26, %s2131_s12  ;;  %p2139_p11 = scmp.lt.u32.totalorder %s2131_s12, %s2577_s15 }
 0x5a2   : > { %p2133_p6 = pnand %p2132_p13, %p2641_p0 }
 0x5a3   : > { %p2138_p8 = por %p2137_p5, %p2136_p4 }
 0x5a4   : > { %p2134_p10 = pneg %p2133_p6 }
 0x5a5   : > { %p2140_p1 = por %p2139_p11, %p2138_p8 }
 0x5a7   : > { %p2141_p3 = pnand %p2140_p1, %p2134_p10 }
 0x5a9   : > { %2144 = shalt.err (!%p2141_p3)
}
 0x5aa   : > { %1937 = dma.vmem_to_hbm [thread:$0]  (%p2641_p0), %s2579_s7, 128, %s2577_s15, %s1681_s16  }
 0x5ab PF: > { %s1706_s11 = sand.u32 1, %s2175_s18   ;;  %p2642_p7 = scmp.ne.s32.totalorder %s2632_s25, 0 }
 0x5ac   : > { %p2643_p9 = scmp.ge.s32.totalorder %s2187_s21, 2  ;;  %s1707_s28 = scalar_lea.sflag [#allocation4], %s1706_s11 }
 0x5ae   : > { %p1951_p12 = pnand %p2643_p9, %p2642_p7 }
 0x5b0   : > { %2170 = dma.done.wait (!%p1951_p12), %s1707_s28, 128  }
 0x5b1   : > { %2172 = vsyncadd (!%p1951_p12), %s1707_s28, 4294967168  ;;  %p19_p2 = scmp.ge.s32.totalorder %s2354_s14, 4   ;;  %s2644_s18 = smov %s2179_s19 }
 0x5b2   : > { %s2645_s19 = smov %s2183_s20  ;;  %s2646_s20 = smov %s2370_s27 }
 0x5b3   : > { %s2647_s21 = smov %s2354_s14  ;;  %21 = sbr.rel (!%p19_p2) target bundleno = 6 (0x6), region = 93 }
 0x5ba   :  { %1712 = vsyncpa [#allocation3], 1 }
 0x5bb   :  { %1714 = vsyncpa [#allocation3 + $0x1], 1 }
 0x5bc   :  { %1715 = vsyncpa [#allocation6], 1 }
 0x5bd   :  { %1716 = vsyncpa [#allocation4], 1 }
 0x5be   :  { %1718 = vsyncpa [#allocation4 + $0x1], 1 }

</bundles_post_ra>
